<compile_context>
chip_gen: v7x
topology: tpu7x:2x2x1
jax: 0.10.0
libtpu: 0.0.40
codegen_flags: <defaults>
</compile_context>

<pallas_src>
import functools

import numpy as np
import jax
import jax.numpy as jnp
from jax.experimental import pallas as pl
from jax.experimental.pallas import tpu as pltpu

EPS = 1e-5
VMEM_LIMIT = 32 * 1024 * 1024       # explicit scoped-VMEM budget (safe on v5e/v6e/v7x)
VMEM_BLOCK_BUDGET = 20 * 1024 * 1024  # keep block working set well under the limit


def _round_up(x, m):
    return (x + m - 1) // m * m


def _cpad(c):
    """Pad a channel count to a multiple of the 128-lane width."""
    return _round_up(c, 128)


@functools.lru_cache(maxsize=None)
def _device_kind():
    try:
        return jax.devices()[0].device_kind.lower()
    except Exception:
        return ""


def _big_mxu():
    """256x256 MXUs exist on v6e / v7x only; default to the safe 128-wide choice."""
    k = _device_kind()
    return ("v6" in k) or ("v7" in k)


def _two_tc():
    """Two TensorCores per chip (v7x) -> worth splitting the parallel grid."""
    return "v7" in _device_kind()


# ---------------------------------------------------------------------------
# Pallas kernels
# ---------------------------------------------------------------------------
def _mm_bn_act_kernel(*refs, nk, relu, has_res, relu_before_res):
    """Tiled matmul, fused BN affine + optional residual add + optional ReLU.

    Epilogue ordering:
      relu_before_res=False : y = [ReLU]( acc*s + b + res )      (resnet-style)
      relu_before_res=True  : y = ReLU( acc*s + b ) + res        (timm head-style)
    """
    x_ref, w_ref, sb_ref = refs[:3]
    idx = 3
    r_ref = None
    if has_res:
        r_ref = refs[idx]
        idx += 1
    o_ref = refs[idx]
    idx += 1
    acc_ref = refs[idx] if nk > 1 else None

    def epilogue(acc):
        y = acc * sb_ref[0:1, :] + sb_ref[1:2, :]
        if relu and relu_before_res:
            y = jnp.maximum(y, 0.0)
        if has_res:
            y = y + r_ref[...].astype(jnp.float32)
        if relu and not relu_before_res:
            y = jnp.maximum(y, 0.0)
        o_ref[...] = y.astype(o_ref.dtype)

    if nk == 1:
        # Single K step (the common case): no accumulator scratch, write straight through.
        epilogue(jnp.dot(x_ref[...], w_ref[...],
                         preferred_element_type=jnp.float32))
    else:
        k = pl.program_id(2)

        @pl.when(k == 0)
        def _():
            acc_ref[...] = jnp.zeros_like(acc_ref)

        acc_ref[...] += jnp.dot(x_ref[...], w_ref[...],
                                preferred_element_type=jnp.float32)

        @pl.when(k == nk - 1)
        def _():
            epilogue(acc_ref[...])


def _matmul_bn_act(patches, w2d, sb, relu, residual=None, relu_before_res=False):
    """(M,K)@(Kp,N) * scale + bias [+ residual][, ReLU] with full-K single-step tiles."""
    M, K = patches.shape
    Kw, N = w2d.shape                      # Kw = round_up(K, 128), pre-padded at build
    big = _big_mxu()
    TN = 256 if (big and N % 256 == 0) else 128
    TM = min(_round_up(M, 16), 256)        # bf16 packs (16,128) per vreg
    Mp = _round_up(M, TM)
    has_res = residual is not None

    # v7x has 2 TensorCores: if the parallel grid would only have a single block,
    # split N (keeps full-height MXU pushes) rather than the tiny M.
    if _two_tc() and (Mp // TM) * (N // TN) == 1 and TN > 128:
        TN = 128

    def block_bytes(tk, multi_k):
        b = 2 * (TM * tk + tk * TN + TM * TN) * 2      # x, w, out (bf16, double buffered)
        b += 2 * 2 * TN * 4                            # scale/bias operand
        if has_res:
            b += 2 * TM * TN * 2
        if multi_k:
            b += TM * TN * 4                           # f32 accumulator scratch
        return b

    if block_bytes(Kw, False) <= VMEM_BLOCK_BUDGET:
        TK, Kp, nk = Kw, Kw, 1                         # full-K single step (fast path)
    else:
        TK = 256 if (big and Kw % 256 == 0) else 128
        while block_bytes(TK, True) > VMEM_BLOCK_BUDGET and TK > 128:
            TK //= 2
        Kp = _round_up(Kw, TK)
        nk = Kp // TK

    xp = patches if (Mp == M and Kp == K) else jnp.pad(
        patches, ((0, Mp - M), (0, Kp - K)))
    wp = w2d if Kp == Kw else jnp.pad(w2d, ((0, Kp - Kw), (0, 0)))

    operands = [xp, wp, sb]
    in_specs = [
        pl.BlockSpec((TM, TK), lambda i, j, k: (i, k)),
        pl.BlockSpec((TK, TN), lambda i, j, k: (k, j)),
        pl.BlockSpec((2, TN), lambda i, j, k: (0, j)),
    ]
    if has_res:
        rp = residual if Mp == M else jnp.pad(residual, ((0, Mp - M), (0, 0)))
        operands.append(rp)
        in_specs.append(pl.BlockSpec((TM, TN), lambda i, j, k: (i, j)))

    scratch = [pltpu.VMEM((TM, TN), jnp.float32)] if nk > 1 else []

    cost = pl.CostEstimate(
        flops=2 * Mp * Kp * N,
        transcendentals=0,
        bytes_accessed=(Mp * Kp + Kp * N + Mp * N * (2 if has_res else 1)) * 2
        + 2 * N * 4)

    out = pl.pallas_call(
        functools.partial(_mm_bn_act_kernel, nk=nk, relu=relu,
                          has_res=has_res, relu_before_res=relu_before_res),
        out_shape=jax.ShapeDtypeStruct((Mp, N), jnp.bfloat16),
        grid_spec=pltpu.PrefetchScalarGridSpec(
            num_scalar_prefetch=0,
            grid=(Mp // TM, N // TN, nk),
            in_specs=in_specs,
            out_specs=pl.BlockSpec((TM, TN), lambda i, j, k: (i, j)),
            scratch_shapes=scratch),
        compiler_params=pltpu.CompilerParams(
            dimension_semantics=("parallel", "parallel", "arbitrary"),
            vmem_limit_bytes=VMEM_LIMIT),
        cost_estimate=cost,
    )(*operands)
    return out if Mp == M else out[:M]


def _add_n_kernel(*refs, n, relu):
    o_ref = refs[n]
    y = refs[0][...].astype(jnp.float32)
    for t in range(1, n):
        y = y + refs[t][...].astype(jnp.float32)
    if relu:
        y = jnp.maximum(y, 0.0)
    o_ref[...] = y.astype(o_ref.dtype)


@functools.partial(jax.jit, static_argnames=("relu",))
def add_n_act(terms, relu=False):
    """Tiled, pipelined elementwise sum of N same-shaped NHWC tensors (+ReLU)."""
    n = len(terms)
    a0 = terms[0]
    C = a0.shape[-1]                      # padded -> multiple of 128 (lane dense)
    flat = [t.reshape(-1, C) for t in terms]
    M = flat[0].shape[0]
    TM = min(_round_up(M, 16), 512)
    Mp = _round_up(M, TM)
    if Mp != M:
        flat = [jnp.pad(f, ((0, Mp - M), (0, 0))) for f in flat]
    cost = pl.CostEstimate(flops=n * Mp * C, transcendentals=0,
                           bytes_accessed=(n + 1) * Mp * C * 2)
    out = pl.pallas_call(
        functools.partial(_add_n_kernel, n=n, relu=relu),
        out_shape=jax.ShapeDtypeStruct((Mp, C), a0.dtype),
        grid=(Mp // TM,),
        in_specs=[pl.BlockSpec((TM, C), lambda i: (i, 0)) for _ in range(n)],
        out_specs=pl.BlockSpec((TM, C), lambda i: (i, 0)),
        compiler_params=pltpu.CompilerParams(
            dimension_semantics=("parallel",),
            vmem_limit_bytes=VMEM_LIMIT),
        cost_estimate=cost,
    )(*flat)
    if Mp != M:
        out = out[:M]
    return out.reshape(a0.shape)


# ---------------------------------------------------------------------------
# Conv = im2col (JAX glue, real channels only, bf16) + Pallas fused matmul
# ---------------------------------------------------------------------------
def _im2col(x, k, stride, pad, slice_cin):
    if slice_cin is not None:
        # Gather only the REAL input channels: removes the 1.3-2.7x zero-MAC /
        # zero-byte contraction padding on the 48/96/192-channel branches.
        x = x[..., :slice_cin]
    N, H, W, C = x.shape
    if pad:
        x = jnp.pad(x, ((0, 0), (pad, pad), (pad, pad), (0, 0)))
    Hp, Wp = H + 2 * pad, W + 2 * pad
    Ho = (Hp - k) // stride + 1
    Wo = (Wp - k) // stride + 1
    cols = []
    for dy in range(k):
        for dx in range(k):
            cols.append(x[:, dy:dy + (Ho - 1) * stride + 1:stride,
                          dx:dx + (Wo - 1) * stride + 1:stride, :])
    # TODO(synk): replace this materialized im2col with an implicit-GEMM tap
    # reduction inside the Pallas kernel (9-long 'arbitrary' tap grid axis).
    patches = jnp.concatenate(cols, axis=-1) if len(cols) > 1 else cols[0]
    return patches.reshape(N * Ho * Wo, k * k * C), (N, Ho, Wo)


@functools.partial(jax.jit,
                   static_argnames=("k", "stride", "pad", "slice_cin",
                                    "relu", "has_res", "relu_before_res"))
def _conv_bn_act(x, w2d, sb, residual, k, stride, pad, slice_cin,
                 relu, has_res, relu_before_res):
    patches, (N_, Ho, Wo) = _im2col(x, k, stride, pad, slice_cin)
    r2 = residual.reshape(-1, residual.shape[-1]) if has_res else None
    y = _matmul_bn_act(patches, w2d, sb, relu, r2, relu_before_res)
    return y.reshape(N_, Ho, Wo, w2d.shape[1])


def conv(x, p, relu, residual=None, relu_before_res=False):
    return _conv_bn_act(x, p["w2d"], p["sb"], residual,
                        k=p["k"], stride=p["stride"], pad=p["pad"],
                        slice_cin=p["slice_cin"], relu=relu,
                        has_res=residual is not None,
                        relu_before_res=relu_before_res)


def upsample_nearest(x, scale):
    # TODO(synk): nn.Upsample(mode='nearest') is pure data movement; fuse into the
    # consuming add kernel via a (i // scale) index_map to avoid the HBM round trip.
    return jnp.repeat(jnp.repeat(x, scale, axis=1), scale, axis=2)


# ---------------------------------------------------------------------------
# Deterministic synthetic parameters (conv weight + folded eval-mode BN).
# cout is padded to 128 lanes (zero scale/bias on pad -> padded channels stay 0);
# for k>1 the contraction runs over the REAL cin only (padded once to 128).
# ---------------------------------------------------------------------------
class PGen:
    def __init__(self, seed=0):
        self.rng = np.random.default_rng(seed)

    def conv_bn(self, cin, cout, k, stride=1, conv_bias=False, raw_input=False):
        pad = k // 2
        in_storage = cin if raw_input else _cpad(cin)
        cout_p = _cpad(cout)
        fan_in = cin * k * k
        w_real = (self.rng.standard_normal((cout, cin, k, k), dtype=np.float32)
                  * np.float32(0.5 * np.sqrt(2.0 / fan_in)))
        if k == 1:
            # 1x1: contract over the stored (lane-padded) channels; pad rows are zero.
            w_full = np.zeros((cout_p, in_storage, 1, 1), np.float32)
            w_full[:cout, :cin] = w_real
            slice_cin = None
            k_real = in_storage
        else:
            # kxk: contract over the real cin only; im2col gathers those channels.
            w_full = np.zeros((cout_p, cin, k, k), np.float32)
            w_full[:cout] = w_real
            slice_cin = None if in_storage == cin else cin
            k_real = k * k * cin
        b = np.zeros((cout_p,), np.float32)
        if conv_bias:
            b[:cout] = self.rng.standard_normal((cout,), dtype=np.float32) * 0.01
        gamma = np.zeros((cout_p,), np.float32)
        gamma[:cout] = 1.0
        beta = np.zeros((cout_p,), np.float32)
        mean = np.zeros((cout_p,), np.float32)
        var = np.ones((cout_p,), np.float32)
        scale = gamma / np.sqrt(var + EPS)          # zero on padded channels
        bias = (b - mean) * scale + beta            # zero on padded channels
        # OIHW -> (dy, dx, cin, cout_p) matching im2col patch order, pad K to 128-mult
        w2d = np.transpose(w_full, (2, 3, 1, 0)).reshape(k_real, cout_p)
        k_pad = _round_up(k_real, 128)
        if k_pad != k_real:
            w2d = np.concatenate(
                [w2d, np.zeros((k_pad - k_real, cout_p), np.float32)], axis=0)
        sb = np.stack([scale, bias], axis=0)        # merged (2, cout_p) operand
        return dict(w2d=jnp.asarray(w2d, jnp.bfloat16),
                    sb=jnp.asarray(sb, jnp.float32),
                    k=k, stride=stride, pad=pad, slice_cin=slice_cin)


# ---------------------------------------------------------------------------
# HRNet building blocks (timm semantics)
# ---------------------------------------------------------------------------
def make_basic(pg, cin, cout, stride=1):
    p = dict(conv1=pg.conv_bn(cin, cout, 3, stride),
             conv2=pg.conv_bn(cout, cout, 3, 1), down=None)
    if stride != 1 or cin != cout:
        p["down"] = pg.conv_bn(cin, cout, 1, stride)
    return p


def basic_fwd(x, p):
    r = x if p["down"] is None else conv(x, p["down"], relu=False)
    y = conv(x, p["conv1"], relu=True)
    # residual add + ReLU fused into the conv2 matmul epilogue (add-then-ReLU)
    return conv(y, p["conv2"], relu=True, residual=r)


def make_bottleneck(pg, cin, planes, stride=1):
    cout = planes * 4
    p = dict(conv1=pg.conv_bn(cin, planes, 1, 1),
             conv2=pg.conv_bn(planes, planes, 3, stride),
             conv3=pg.conv_bn(planes, cout, 1, 1), down=None)
    if stride != 1 or cin != cout:
        p["down"] = pg.conv_bn(cin, cout, 1, stride)
    return p


def bottleneck_fwd(x, p):
    r = x if p["down"] is None else conv(x, p["down"], relu=False)
    y = conv(x, p["conv1"], relu=True)
    y = conv(y, p["conv2"], relu=True)
    # residual add + ReLU fused into the conv3 matmul epilogue (add-then-ReLU)
    return conv(y, p["conv3"], relu=True, residual=r)


def make_layer(pg, block, cin, planes, n_blocks, stride=1):
    make = make_bottleneck if block == "bottleneck" else make_basic
    exp = 4 if block == "bottleneck" else 1
    blocks = [make(pg, cin, planes, stride)]
    cin = planes * exp
    for _ in range(n_blocks - 1):
        blocks.append(make(pg, cin, planes, 1))
    return blocks


def run_layer(x, blocks, block):
    fwd = bottleneck_fwd if block == "bottleneck" else basic_fwd
    for b in blocks:
        x = fwd(x, b)
    return x


def make_transition(pg, pre_ch, cur_ch):
    trans = []
    for i, c in enumerate(cur_ch):
        if i < len(pre_ch):
            if c != pre_ch[i]:
                trans.append([(pg.conv_bn(pre_ch[i], c, 3, 1), True)])
            else:
                trans.append(None)  # nn.Identity
        else:
            convs = []
            for j in range(i + 1 - len(pre_ch)):
                cin = pre_ch[-1]
                cout = c if j == i - len(pre_ch) else cin
                convs.append((pg.conv_bn(cin, cout, 3, 2), True))
            trans.append(convs)
    return trans


def run_trans_branch(x, convs):
    for p, r in convs:
        x = conv(x, p, relu=r)
    return x


def make_hr_module(pg, nbranch, nblocks, channels):
    branches = [make_layer(pg, "basic", channels[i], channels[i], nblocks[i])
                for i in range(nbranch)]
    # TODO(synk): pack the 1x1 up-convs consuming the same source branch into one
    # GEMM along N (concat cout) to fill the 256-wide MXU on the tiny-M branches.
    fuse = []
    for i in range(nbranch):
        row = []
        for j in range(nbranch):
            if j > i:
                row.append(dict(kind="up", scale=2 ** (j - i),
                                conv=pg.conv_bn(channels[j], channels[i], 1, 1)))
            elif j == i:
                row.append(dict(kind="id"))
            else:
                convs = []
                for t in range(i - j):
                    if t == i - j - 1:
                        convs.append((pg.conv_bn(channels[j], channels[i], 3, 2), False))
                    else:
                        convs.append((pg.conv_bn(channels[j], channels[j], 3, 2), True))
                row.append(dict(kind="down", convs=convs))
        fuse.append(row)
    return dict(branches=branches, fuse=fuse, nbranch=nbranch)


def hr_module_fwd(xs, m):
    nb = m["nbranch"]
    xs = [run_layer(x, br, "basic") for x, br in zip(xs, m["branches"])]
    outs = []
    for i in range(nb):
        # For i > 0 the identity term xs[i] is fused as the residual of the last
        # conv of the first 'down' chain (sum is associative -> same result).
        n_rem = nb - 1 if i > 0 else nb
        identity_pending = i > 0
        terms = []
        if i == 0:
            terms.append(xs[0])
        for j in range(nb):
            f = m["fuse"][i][j]
            if f["kind"] == "id":
                continue
            if f["kind"] == "up":
                terms.append(upsample_nearest(conv(xs[j], f["conv"], relu=False),
                                              f["scale"]))
            else:  # down chain (j < i)
                t = xs[j]
                for p, r in f["convs"][:-1]:
                    t = conv(t, p, relu=r)
                p_last, _ = f["convs"][-1]
                if identity_pending:
                    # bn(conv) + xs[i]; if it is the only remaining term the final
                    # fuse ReLU is folded into this epilogue as well.
                    t = conv(t, p_last, relu=(n_rem == 1), residual=xs[i],
                             relu_before_res=False)
                    identity_pending = False
                else:
                    t = conv(t, p_last, relu=False)
                terms.append(t)
        if len(terms) == 1:
            outs.append(terms[0])                       # ReLU already fused
        else:
            outs.append(add_n_act(tuple(terms), relu=True))
    return outs


# ---------------------------------------------------------------------------
# HRNet-W48 model (timm cfg: stem 64; stages [48], [48,96], [48,96,192], [48,96,192,384])
# ---------------------------------------------------------------------------
def build_hrnet_w48(seed=0):
    pg = PGen(seed)
    params = {}
    params["conv1"] = pg.conv_bn(3, 64, 3, 2, raw_input=True)  # raw 3-channel input
    params["conv2"] = pg.conv_bn(64, 64, 3, 2)
    params["layer1"] = make_layer(pg, "bottleneck", 64, 64, 4)

    s2_ch, s3_ch, s4_ch = [48, 96], [48, 96, 192], [48, 96, 192, 384]
    params["transition1"] = make_transition(pg, [256], s2_ch)
    params["stage2"] = [make_hr_module(pg, 2, (4, 4), s2_ch) for _ in range(1)]
    params["transition2"] = make_transition(pg, s2_ch, s3_ch)
    params["stage3"] = [make_hr_module(pg, 3, (4, 4, 4), s3_ch) for _ in range(4)]
    params["transition3"] = make_transition(pg, s3_ch, s4_ch)
    params["stage4"] = [make_hr_module(pg, 4, (4, 4, 4, 4), s4_ch) for _ in range(3)]

    head_ch = [32, 64, 128, 256]
    params["incre"] = [make_layer(pg, "bottleneck", s4_ch[i], head_ch[i], 1)
                       for i in range(4)]
    params["downsamp"] = [pg.conv_bn(head_ch[i] * 4, head_ch[i + 1] * 4, 3, 2,
                                     conv_bias=True) for i in range(3)]
    params["final"] = pg.conv_bn(head_ch[3] * 4, 2048, 1, 1, conv_bias=True)
    return params


def hrnet_w48_forward_features(params, x_nchw):
    # NCHW -> NHWC, bf16 activations throughout (f32 accumulation inside kernels)
    x = jnp.transpose(x_nchw, (0, 2, 3, 1)).astype(jnp.bfloat16)
    # stem
    x = conv(x, params["conv1"], relu=True)
    x = conv(x, params["conv2"], relu=True)
    # stage 1
    x = run_layer(x, params["layer1"], "bottleneck")
    # transition1 (all branches take the single stage-1 output)
    yl = [run_trans_branch(x, t) for t in params["transition1"]]
    for m in params["stage2"]:
        yl = hr_module_fwd(yl, m)
    yl = [run_trans_branch(yl[-1], t) if t is not None else yl[i]
          for i, t in enumerate(params["transition2"])]
    for m in params["stage3"]:
        yl = hr_module_fwd(yl, m)
    yl = [run_trans_branch(yl[-1], t) if t is not None else yl[i]
          for i, t in enumerate(params["transition3"])]
    for m in params["stage4"]:
        yl = hr_module_fwd(yl, m)
    # classification head: timm does  y = incre(yl[i+1]) + ReLU(BN(conv(y)))
    # -> fuse the add into the downsample-conv epilogue (ReLU-then-add ordering).
    y = run_layer(yl[0], params["incre"][0], "bottleneck")
    for i, dn in enumerate(params["downsamp"]):
        y_incre = run_layer(yl[i + 1], params["incre"][i + 1], "bottleneck")
        y = conv(y, dn, relu=True, residual=y_incre, relu_before_res=True)
    y = conv(y, params["final"], relu=True)
    # back to NCHW, f32 (2048 channels need no un-padding: already 16*128)
    return jnp.transpose(y, (0, 3, 1, 2)).astype(jnp.float32)


if __name__ == "__main__":
    key = jax.random.PRNGKey(0)
    x = jax.random.normal(key, (2, 3, 64, 64), jnp.float32)  # NCHW, like PyTorch
    params = build_hrnet_w48(seed=0)
    out = hrnet_w48_forward_features(params, x)
    out = jax.block_until_ready(out)
    assert out.shape == (2, 2048, 2, 2), out.shape
    assert bool(jnp.all(jnp.isfinite(out)))
    print("KERNEL_OK")
</pallas_src>

<mosaic_0001>
module attributes {stable_mosaic.version = 11 : i64} {
  func.func @_mm_bn_act_kernel(%arg0: i32, %arg1: i32, %arg2: i32, %arg3: memref<256x128xbf16, #tpu.memory_space<vmem>>, %arg4: memref<128x128xbf16, #tpu.memory_space<vmem>>, %arg5: memref<2x128xf32, #tpu.memory_space<vmem>>, %arg6: memref<256x128xbf16, #tpu.memory_space<vmem>>) attributes {dimension_semantics = [#tpu.dimension_semantics<parallel>, #tpu.dimension_semantics<parallel>, #tpu.dimension_semantics<arbitrary>], iteration_bounds = array<i64: 8, 1, 1>, scalar_prefetch = 0 : i64, scratch_operands = 0 : i64, tpu.core_type = #tpu.core_type<tc>, window_params = [{transform_indices = @transform_0, window_bounds = array<i64: 256, 128>}, {transform_indices = @transform_1, window_bounds = array<i64: 128, 128>}, {transform_indices = @transform_2, window_bounds = array<i64: 2, 128>}, {transform_indices = @transform_3, window_bounds = array<i64: 256, 128>}]} {
    %c0 = arith.constant 0 : index
    %c0_0 = arith.constant 0 : index
    %0 = vector.load %arg3[%c0, %c0_0] : memref<256x128xbf16, #tpu.memory_space<vmem>>, vector<256x128xbf16>
    %c0_1 = arith.constant 0 : index
    %c0_2 = arith.constant 0 : index
    %1 = vector.load %arg4[%c0_1, %c0_2] : memref<128x128xbf16, #tpu.memory_space<vmem>>, vector<128x128xbf16>
    %cst = arith.constant dense<0.000000e+00> : vector<256x128xf32>
    %2 = tpu.matmul %0, %1, %cst {dimension_numbers = #tpu.dot_dimension_numbers<[1], [0], [0], [1], [0, 0, 1, 1], [], []>} : vector<256x128xbf16>, vector<128x128xbf16>, vector<256x128xf32> -> vector<256x128xf32>
    %c0_3 = arith.constant 0 : index
    %c0_4 = arith.constant 0 : index
    %3 = vector.load %arg5[%c0_3, %c0_4] : memref<2x128xf32, #tpu.memory_space<vmem>>, vector<1x128xf32>
    %4 = vector.broadcast %3 : vector<1x128xf32> to vector<256x128xf32>
    %5 = arith.mulf %2, %4 : vector<256x128xf32>
    %c1 = arith.constant 1 : index
    %c0_5 = arith.constant 0 : index
    %6 = vector.load %arg5[%c1, %c0_5] : memref<2x128xf32, #tpu.memory_space<vmem>>, vector<1x128xf32>
    %7 = vector.broadcast %6 : vector<1x128xf32> to vector<256x128xf32>
    %8 = arith.addf %5, %7 : vector<256x128xf32>
    %cst_6 = arith.constant 0.000000e+00 : f32
    %9 = vector.broadcast %cst_6 : f32 to vector<256x128xf32>
    %10 = arith.maximumf %8, %9 : vector<256x128xf32>
    %11 = arith.truncf %10 : vector<256x128xf32> to vector<256x128xbf16>
    %c0_7 = arith.constant 0 : index
    %c0_8 = arith.constant 0 : index
    %12 = vector.load %arg6[%c0_7, %c0_8] : memref<256x128xbf16, #tpu.memory_space<vmem>>, vector<256x128xbf16>
    tpu.vector_store %arg6[%c0_7, %c0_8], %11 {strides = array<i32>} : memref<256x128xbf16, #tpu.memory_space<vmem>>, vector<256x128xbf16>,
    return
  }
  func.func @transform_0(%arg0: i32, %arg1: i32, %arg2: i32) -> (i32, i32) {
    %c0_i32 = arith.constant 0 : i32
    return %arg0, %arg2 : i32, i32
  }
  func.func @transform_1(%arg0: i32, %arg1: i32, %arg2: i32) -> (i32, i32) {
    %c0_i32 = arith.constant 0 : i32
    return %arg2, %arg1 : i32, i32
  }
  func.func @transform_2(%arg0: i32, %arg1: i32, %arg2: i32) -> (i32, i32) {
    %c0_i32 = arith.constant 0 : i32
    %c0_i32_0 = arith.constant 0 : i32
    return %c0_i32, %arg1 : i32, i32
  }
  func.func @transform_3(%arg0: i32, %arg1: i32, %arg2: i32) -> (i32, i32) {
    %c0_i32 = arith.constant 0 : i32
    return %arg0, %arg1 : i32, i32
  }
}

</mosaic_0001>

<bundles_post_ra>
// kernel: _conv_bn_act.1
= control target key start
LH: loop header
LB: loop body
LE: loop exit
PB: predicated region body
PF: predicated region fallthrough
CT: control target
= control target key end

     0   :  { %8 = vsyncpa [#allocation3], 0  ;;  %s1726_s0 = inlined_call_operand.vmem [shape: bf16[2048,128], index: 0, kind: input, shape index: {}]   ;;  %s1727_s1 = inlined_call_operand.vmem [shape: bf16[128,128], index: 1, kind: input, shape index: {}]   ;;  %s1728_s2 = inlined_call_operand.vmem [shape: f32[2,128], index: 2, kind: input, shape index: {}]   ;;  %s1729_s3 = inlined_call_operand.hbm [shape: bf16[2048,128], index: 3, kind: output, shape index: {}]  }
   0x1   :  { %10 = vsyncpa [#allocation3 + $0x1], 0  ;;  %s1473_s12 = smov 0   ;;  %s1475_s13 = smov 0  }
   0x2   :  { %s1477_s14 = smov 0   ;;  %s1479_s15 = smov 0  }
   0x3   :  { %s1481_s16 = smov 0   ;;  %s1483_s17 = smov 0  }
   0x4 LB: > { %s1000_s18 = sadd.s32 4294967295, %s1448_s17   ;;  %s1001_s19 = sadd.s32 4294967294, %s1448_s17   ;;  %s1448_s17 = sphi %s1483_s17, %s16_s17   ;;  %s1444_s16 = sphi %s1481_s16, %s1736_s16   ;;  %s1440_s15 = sphi %s1479_s15, %s1735_s15   ;;  %s1436_s14 = sphi %s1477_s14, %s1734_s14   ;;  %s1432_s13 = sphi %s1475_s13, %s1733_s13   ;;  %s1428_s12 = sphi %s1473_s12, %s1732_s12  }
   0x5   : > { %s35_s20 = sadd.s32 1, %s1444_s16  ;;  %s126_s21 = sadd.s32 1, %s1436_s14 }
   0x6   : > { %p37_p0 = scmp.ge.s32.totalorder %s35_s20, 8  ;;  %p136_p1 = scmp.ne.s32.totalorder %s1436_s14, %s1432_s13 }
   0x7   : > { %p137_p2 = scmp.eq.s32.totalorder %s1000_s18, 7  ;;  %p142_p3 = scmp.ne.s32.totalorder %s1432_s13, %s1428_s12 }
   0x8   : > { %s1738_s20 = smov (%p37_p0, %s35_s20), 0  ;;  %p143_p5 = scmp.eq.s32.totalorder %s1001_s19, 7 }
   0x9   : > { %p1513_p4 = por %p137_p2, %p136_p1  ;;  %s121_s23 = ssub.s32 %s1444_s16, %s1738_s20 }
   0xa   : > { %p1006_p6 = scmp.ge.s32.totalorder %s1448_s17, 1  ;;  %p124_p7 = scmp.eq.s32.totalorder %s121_s23, 0 }
   0xb   : > { %p1520_p8 = por %p143_p5, %p142_p3  ;;  %p192_p9 = scmp.lt.s32.totalorder %s1448_s17, 9 }
   0xc   : > { %s1526_s25 = scalar_select %p124_p7, %s1436_s14, %s126_s21  }
   0xd   : > { %p193_p10 = pnand %p1006_p6, %p192_p9 }
   0xe   : > { %v1346_v0 = vld [vmem:[%s1727_s1] sm:$0xff] (!%p193_p10)   ;;  %s1008_s28 = sshll.u32 (!%p193_p10), %s1440_s15, 5  ;;  %v1347_v1 = vld [vmem:[%s1727_s1 + $0x8] sm:$0xff] (!%p193_p10)   ;;  %v1348_v2 = vld [vmem:[%s1727_s1 + $0x10] sm:$0xff] (!%p193_p10)   ;;  %s228_s7 = sand.u32 (!%p193_p10), 1, %s1432_s13  }
   0xf   : > { %196 = sbr.rel (%p193_p10) target bundleno = 310 (0x136), region = 32  ;;  %p232_p11 = scmp.lt.s32.totalorder (!%p193_p10), %s1008_s28, 255  ;;  %1225 = vmatprep.subr.bf16.mxu0 (!%p193_p10), %v1346_v0  ;;  %1273 = vmatprep.subr.bf16.mxu1 (!%p193_p10), %v1346_v0  ;;  %v1349_v3 = vld [vmem:[%s1727_s1 + $0x18] sm:$0xff] (!%p193_p10)   ;;  %v1350_v6 = vld [vmem:[%s1727_s1 + $0x20] sm:$0xff] (!%p193_p10)   ;;  %v1351_v7 = vld [vmem:[%s1727_s1 + $0x28] sm:$0xff] (!%p193_p10)  }
  0x10   : > { %1226 = vmatpush3.bf16.msra.mxu0 (!%p193_p10), %v1346_v0  ;;  %1281 = vmatpush3.bf16.msra.mxu1 (!%p193_p10), %v1346_v0  ;;  %v1352_v8 = vld [vmem:[%s1727_s1 + $0x30] sm:$0xff] (!%p193_p10)   ;;  %v1353_v9 = vld [vmem:[%s1727_s1 + $0x38] sm:$0xff] (!%p193_p10)   ;;  %v1577_v24 = vld [vmem:[%s1728_s2] ss:$0 sm:$0xff] (!%p193_p10)  ;;  %s1007_s8 = sshll.u32 (!%p193_p10), %s228_s7, 7  ;;  %s1105_s10 = sshll.u32 (!%p193_p10), %s1440_s15, 11 }
  0x11   : > { %1227 = vmatprep.subr.bf16.mxu0 (!%p193_p10), %v1347_v1  ;;  %1274 = vmatprep.subr.bf16.mxu1 (!%p193_p10), %v1347_v1  ;;  %v1582_v26 = vld [vmem:[%s1728_s2 + $0x1] ss:$0 sm:$0xff] (!%p193_p10)  ;;  %s1670_s15 = scalar_lea.hbm (!%p193_p10), %s1729_s3, %s1105_s10  ;;  %s1680_s21 = scalar_lea.sflag (!%p193_p10), [#allocation3], %s228_s7 }
  0x12   : > { %s1450_s26 = smov (!%p193_p10), [#allocation2]  }
  0x13   : > { %s1374_s27 = sshll.u32 (!%p193_p10), %s1450_s26, 4  ;;  %s1375_s27 = int_to_ptr.vmem [resolvable:$false] %s1374_s27 }
  0x14   : > { %1228 = vmatpush3.bf16.msra.mxu0 (!%p193_p10), %v1347_v1  ;;  %1282 = vmatpush3.bf16.msra.mxu1 (!%p193_p10), %v1347_v1 }
  0x15   : > { %1229 = vmatprep.subr.bf16.mxu0 (!%p193_p10), %v1348_v2  ;;  %1275 = vmatprep.subr.bf16.mxu1 (!%p193_p10), %v1348_v2 }
  0x16   : > { %s1740_s28 = smov (!%p232_p11, %s1008_s28), 255 }
  0x17   : > { %s1009_s6 = sshll.u32 %s1740_s28, 2  ;;  %s1376_s28 = scalar_lea.vmem %s1375_s27, 4096 }
  0x18   : > { %s1541_s9 = scalar_lea.vmem %s1726_s0, %s1009_s6  ;;  %1230 = vmatpush3.bf16.msra.mxu0 %v1348_v2  ;;  %1283 = vmatpush3.bf16.msra.mxu1 %v1348_v2 }
  0x19   : > { %v1354_v4 = vld [vmem:[%s1541_s9] sm:$0xff]   ;;  %1231 = vmatprep.subr.bf16.mxu0 %v1349_v3  ;;  %1276 = vmatprep.subr.bf16.mxu1 %v1349_v3  ;;  %v1356_v10 = vld [vmem:[%s1541_s9 + $0x8] sm:$0xff]   ;;  %v1358_v12 = vld [vmem:[%s1541_s9 + $0x10] sm:$0xff]  }
  0x1a   : > { %v1355_v5 = vld [vmem:[%s1541_s9 + $0x40] sm:$0xff]   ;;  %1241 = vmatprep.mubr.bf16.mxu0 %v1354_v4  ;;  %v1357_v11 = vld [vmem:[%s1541_s9 + $0x48] sm:$0xff]   ;;  %v1359_v13 = vld [vmem:[%s1541_s9 + $0x50] sm:$0xff]  }
  0x1b   : > { %1257 = vmatprep.mubr.bf16.mxu1 %v1355_v5  ;;  %v1360_v14 = vld [vmem:[%s1541_s9 + $0x18] sm:$0xff]   ;;  %v1362_v16 = vld [vmem:[%s1541_s9 + $0x20] sm:$0xff]   ;;  %v1364_v18 = vld [vmem:[%s1541_s9 + $0x28] sm:$0xff]  }
  0x1c   : > { %1232 = vmatpush3.bf16.msra.mxu0 %v1349_v3  ;;  %1284 = vmatpush3.bf16.msra.mxu1 %v1349_v3  ;;  %v1361_v15 = vld [vmem:[%s1541_s9 + $0x58] sm:$0xff]   ;;  %v1363_v17 = vld [vmem:[%s1541_s9 + $0x60] sm:$0xff]   ;;  %v1365_v19 = vld [vmem:[%s1541_s9 + $0x68] sm:$0xff]  }
  0x1d   : > { %1233 = vmatprep.subr.bf16.mxu0 %v1350_v6  ;;  %1277 = vmatprep.subr.bf16.mxu1 %v1350_v6  ;;  %v1366_v20 = vld [vmem:[%s1541_s9 + $0x30] sm:$0xff]   ;;  %v1368_v22 = vld [vmem:[%s1541_s9 + $0x38] sm:$0xff]  }
  0x1e   : > { %v1367_v21 = vld [vmem:[%s1541_s9 + $0x70] sm:$0xff]   ;;  %v1369_v23 = vld [vmem:[%s1541_s9 + $0x78] sm:$0xff]   ;;  %s1607_s9 = scalar_lea.vmem [#allocation2], %s1007_s8 }
  0x1f   : > { %s889_s11 = sshll.u32 %s1607_s9, 4  ;;  %s1672_s11 = int_to_ptr.vmem [resolvable:$true] %s889_s11 }
  0x20   : > { %1234 = vmatpush3.bf16.msra.mxu0 %v1350_v6  ;;  %1285 = vmatpush3.bf16.msra.mxu1 %v1350_v6  ;;  %s1370_s23 = scalar_lea.vmem %s1672_s11, 2048  ;;  %p1377_p1 = scmp.lt.s32.totalorder %s1672_s11, %s1375_s27 }
  0x21   : > { %1235 = vmatprep.subr.bf16.mxu0 %v1351_v7  ;;  %1278 = vmatprep.subr.bf16.mxu1 %v1351_v7  ;;  %p1371_p12 = scmp.ne.s32.totalorder %s1672_s11, %s1370_s23  ;;  %p1378_p2 = scmp.lt.s32.totalorder %s1376_s28, %s1370_s23 }
  0x23   : > { %p1372_p13 = pnand %p1371_p12, %p1513_p4  ;;  %p1379_p3 = por %p1378_p2, %p1377_p1 }
  0x24   : > { %1236 = vmatpush3.bf16.msra.mxu0 %v1351_v7  ;;  %1286 = vmatpush3.bf16.msra.mxu1 %v1351_v7 }
  0x25   : > { %1237 = vmatprep.subr.bf16.mxu0 %v1352_v8  ;;  %1279 = vmatprep.subr.bf16.mxu1 %v1352_v8  ;;  %p1373_p0 = pneg %p1372_p13 }
  0x27   : > { %p1380_p5 = pnand %p1379_p3, %p1373_p0 }
  0x28   : > { %1238 = vmatpush3.bf16.msra.mxu0 %v1352_v8  ;;  %1287 = vmatpush3.bf16.msra.mxu1 %v1352_v8 }
  0x29   : > { %1239 = vmatprep.subr.bf16.mxu0 %v1353_v9  ;;  %1280 = vmatprep.subr.bf16.mxu1 %v1353_v9 }
  0x2c   : > { %1240 = vmatpush3.bf16.msra.mxu0 %v1353_v9  ;;  %1288 = vmatpush3.bf16.msra.mxu1 %v1353_v9 }
  0x2f   : > { %1242 = vmatmul.mubr.bf16.vlgmr.msra.gmra.mrb[0].mxu0 %v1356_v10  ;;  %1258 = vmatmul.mubr.bf16.vlgmr.msra.gmra.mrb[0].mxu1 %v1357_v11 }
  0x30   : > { %1245 = vmatprep.mubr.bf16.mxu0 %v1358_v12  ;;  %1261 = vmatprep.mubr.bf16.mxu1 %v1359_v13 }
  0x37   : > { %1246 = vmatmul.mubr.bf16.gmra.mrb[4].mxu0 %v1360_v14  ;;  %1262 = vmatmul.mubr.bf16.gmra.mrb[4].mxu1 %v1361_v15 }
  0x38   : > { %1249 = vmatprep.mubr.bf16.mxu0 %v1362_v16  ;;  %1265 = vmatprep.mubr.bf16.mxu1 %v1363_v17 }
  0x3f   : > { %1250 = vmatmul.mubr.bf16.gmra.mrb[8].mxu0 %v1364_v18  ;;  %1266 = vmatmul.mubr.bf16.gmra.mrb[8].mxu1 %v1365_v19 }
  0x40   : > { %1253 = vmatprep.mubr.bf16.mxu0 %v1366_v20  ;;  %1269 = vmatprep.mubr.bf16.mxu1 %v1367_v21 }
  0x47   : > { %1254 = vmatmul.mubr.bf16.gmra.mrb[12].mxu0 %v1368_v22  ;;  %1270 = vmatmul.mubr.bf16.gmra.mrb[12].mxu1 %v1369_v23 }
 0x102   : > { %v1243_v25 = vpop.f32.mrb[0].mxu0  ;;  %v1259_v27 = vpop.f32.mrb[0].mxu1 }
 0x103   : > { %v615_v28 = vmul.f32 %v1243_v25, %v1577_v24  ;;  %v631_v29 = vmul.f32 %v1259_v27, %v1577_v24  ;;  %v481_v30 = vpop.f32.mrb[1].mxu0  ;;  %v545_v31 = vpop.f32.mrb[1].mxu1 }
 0x104   : > { %v613_v32 = vmul.f32 %v1577_v24, %v481_v30  ;;  %v629_v33 = vmul.f32 %v1577_v24, %v545_v31  ;;  %v1244_v34 = vpop.f32.mrb[2].mxu0  ;;  %v1260_v35 = vpop.f32.mrb[2].mxu1 }
 0x105   : > { %v652_v36 = vadd.f32 %v1582_v26, %v615_v28  ;;  %v668_v37 = vadd.f32 %v1582_v26, %v631_v29  ;;  %v616_v38 = vmul.f32 %v1244_v34, %v1577_v24  ;;  %v632_v39 = vmul.f32 %v1260_v35, %v1577_v24  ;;  %v484_v40 = vpop.f32.mrb[3].mxu0  ;;  %v548_v41 = vpop.f32.mrb[3].mxu1 }
 0x106   : > { %v650_v42 = vadd.f32 %v1582_v26, %v613_v32  ;;  %v666_v43 = vadd.f32 %v1582_v26, %v629_v33  ;;  %v614_v44 = vmul.f32 %v1577_v24, %v484_v40  ;;  %v630_v45 = vmul.f32 %v1577_v24, %v548_v41 }
 0x107   : > { %v653_v46 = vadd.f32 %v1582_v26, %v616_v38  ;;  %v669_v47 = vadd.f32 %v1582_v26, %v632_v39  ;;  %v684_v50 = vmax.f32 %v652_v36, 0.0  ;;  %v700_v51 = vmax.f32 %v668_v37, 0.0 }
 0x108   : > { %v651_v48 = vadd.f32 %v1582_v26, %v614_v44  ;;  %v667_v49 = vadd.f32 %v1582_v26, %v630_v45  ;;  %v682_v54 = vmax.f32 %v650_v42, 0.0  ;;  %v698_v55 = vmax.f32 %v666_v43, 0.0 }
 0x109   : > { %v685_v52 = vmax.f32 %v653_v46, 0.0  ;;  %v701_v53 = vmax.f32 %v669_v47, 0.0 }
 0x10a   : > { %v683_v56 = vmax.f32 %v651_v48, 0.0  ;;  %v699_v57 = vmax.f32 %v667_v49, 0.0  ;;  %v1247_v58 = vpop.f32.mrb[4].mxu0  ;;  %v1263_v59 = vpop.f32.mrb[4].mxu1 }
 0x10b   : > { %v1114_v60 = vpack.c.bf16 %v685_v52, %v684_v50  ;;  %v1154_v61 = vpack.c.bf16 %v701_v53, %v700_v51  ;;  %v619_v62 = vmul.f32 %v1247_v58, %v1577_v24  ;;  %v635_v63 = vmul.f32 %v1263_v59, %v1577_v24  ;;  %v497_v0 = vpop.f32.mrb[5].mxu0  ;;  %v561_v1 = vpop.f32.mrb[5].mxu1 }
 0x10c   : > { %v1109_v2 = vpack.c.bf16 %v683_v56, %v682_v54  ;;  %v1149_v3 = vpack.c.bf16 %v699_v57, %v698_v55  ;;  %v617_v4 = vmul.f32 %v1577_v24, %v497_v0  ;;  %v633_v5 = vmul.f32 %v1577_v24, %v561_v1  ;;  %v1248_v6 = vpop.f32.mrb[6].mxu0  ;;  %v1264_v7 = vpop.f32.mrb[6].mxu1 }
 0x10d   : > { %1186 = vst [vmem:[%s1607_s9 + $0x8] sm:$0xff] %v1114_v60   ;;  %1194 = vst [vmem:[%s1607_s9 + $0x48] sm:$0xff] %v1154_v61   ;;  %v656_v8 = vadd.f32 %v1582_v26, %v619_v62  ;;  %v672_v9 = vadd.f32 %v1582_v26, %v635_v63  ;;  %v620_v10 = vmul.f32 %v1248_v6, %v1577_v24  ;;  %v500_v12 = vpop.f32.mrb[7].mxu0  ;;  %v564_v13 = vpop.f32.mrb[7].mxu1 }
 0x10e   : > { %v636_v11 = vmul.f32 %v1264_v7, %v1577_v24  ;;  %1110 = vst [vmem:[%s1607_s9] sm:$0xff] %v1109_v2   ;;  %1193 = vst [vmem:[%s1607_s9 + $0x40] sm:$0xff] %v1149_v3   ;;  %v654_v14 = vadd.f32 %v1582_v26, %v617_v4  ;;  %v670_v15 = vadd.f32 %v1582_v26, %v633_v5 }
 0x10f   : > { %v618_v16 = vmul.f32 %v1577_v24, %v500_v12  ;;  %v634_v17 = vmul.f32 %v1577_v24, %v564_v13  ;;  %v657_v18 = vadd.f32 %v1582_v26, %v620_v10  ;;  %v688_v22 = vmax.f32 %v656_v8, 0.0 }
 0x110   : > { %v673_v19 = vadd.f32 %v1582_v26, %v636_v11  ;;  %v704_v23 = vmax.f32 %v672_v9, 0.0  ;;  %v686_v28 = vmax.f32 %v654_v14, 0.0  ;;  %v702_v29 = vmax.f32 %v670_v15, 0.0 }
 0x111   : > { %v655_v20 = vadd.f32 %v1582_v26, %v618_v16  ;;  %v671_v21 = vadd.f32 %v1582_v26, %v634_v17  ;;  %v689_v25 = vmax.f32 %v657_v18, 0.0 }
 0x112   : > { %v705_v27 = vmax.f32 %v673_v19, 0.0  ;;  %v1251_v32 = vpop.f32.mrb[8].mxu0  ;;  %v1267_v33 = vpop.f32.mrb[8].mxu1 }
 0x113   : > { %v687_v30 = vmax.f32 %v655_v20, 0.0  ;;  %v703_v31 = vmax.f32 %v671_v21, 0.0  ;;  %v1124_v34 = vpack.c.bf16 %v689_v25, %v688_v22  ;;  %v623_v36 = vmul.f32 %v1251_v32, %v1577_v24  ;;  %v513_v38 = vpop.f32.mrb[9].mxu0  ;;  %v577_v39 = vpop.f32.mrb[9].mxu1 }
 0x114   : > { %v1164_v35 = vpack.c.bf16 %v705_v27, %v704_v23  ;;  %v639_v37 = vmul.f32 %v1267_v33, %v1577_v24  ;;  %v621_v42 = vmul.f32 %v1577_v24, %v513_v38  ;;  %v637_v43 = vmul.f32 %v1577_v24, %v577_v39  ;;  %v1252_v44 = vpop.f32.mrb[10].mxu0  ;;  %v1268_v45 = vpop.f32.mrb[10].mxu1 }
 0x115   : > { %v1119_v40 = vpack.c.bf16 %v687_v30, %v686_v28  ;;  %v1159_v41 = vpack.c.bf16 %v703_v31, %v702_v29  ;;  %1188 = vst [vmem:[%s1607_s9 + $0x18] sm:$0xff] %v1124_v34   ;;  %v660_v46 = vadd.f32 %v1582_v26, %v623_v36  ;;  %v624_v48 = vmul.f32 %v1252_v44, %v1577_v24  ;;  %v516_v50 = vpop.f32.mrb[11].mxu0  ;;  %v580_v51 = vpop.f32.mrb[11].mxu1 }
 0x116   : > { %1196 = vst [vmem:[%s1607_s9 + $0x58] sm:$0xff] %v1164_v35   ;;  %v676_v47 = vadd.f32 %v1582_v26, %v639_v37  ;;  %v640_v49 = vmul.f32 %v1268_v45, %v1577_v24  ;;  %v658_v52 = vadd.f32 %v1582_v26, %v621_v42  ;;  %v674_v53 = vadd.f32 %v1582_v26, %v637_v43 }
 0x117   : > { %1187 = vst [vmem:[%s1607_s9 + $0x10] sm:$0xff] %v1119_v40   ;;  %1195 = vst [vmem:[%s1607_s9 + $0x50] sm:$0xff] %v1159_v41   ;;  %v622_v54 = vmul.f32 %v1577_v24, %v516_v50  ;;  %v638_v55 = vmul.f32 %v1577_v24, %v580_v51  ;;  %v661_v56 = vadd.f32 %v1582_v26, %v624_v48  ;;  %v692_v60 = vmax.f32 %v660_v46, 0.0 }
 0x118   : > { %v677_v57 = vadd.f32 %v1582_v26, %v640_v49  ;;  %v708_v61 = vmax.f32 %v676_v47, 0.0  ;;  %v690_v0 = vmax.f32 %v658_v52, 0.0  ;;  %v706_v1 = vmax.f32 %v674_v53, 0.0 }
 0x119   : > { %v659_v58 = vadd.f32 %v1582_v26, %v622_v54  ;;  %v675_v59 = vadd.f32 %v1582_v26, %v638_v55  ;;  %v693_v62 = vmax.f32 %v661_v56, 0.0 }
 0x11a   : > { %v709_v63 = vmax.f32 %v677_v57, 0.0  ;;  %v1255_v4 = vpop.f32.mrb[12].mxu0  ;;  %v1271_v5 = vpop.f32.mrb[12].mxu1 }
 0x11b   : > { %v691_v2 = vmax.f32 %v659_v58, 0.0  ;;  %v707_v3 = vmax.f32 %v675_v59, 0.0  ;;  %v1134_v6 = vpack.c.bf16 %v693_v62, %v692_v60  ;;  %v627_v8 = vmul.f32 %v1255_v4, %v1577_v24  ;;  %v529_v10 = vpop.f32.mrb[13].mxu0  ;;  %v593_v11 = vpop.f32.mrb[13].mxu1 }
 0x11c   : > { %v1174_v7 = vpack.c.bf16 %v709_v63, %v708_v61  ;;  %v643_v9 = vmul.f32 %v1271_v5, %v1577_v24  ;;  %v625_v14 = vmul.f32 %v1577_v24, %v529_v10  ;;  %v641_v15 = vmul.f32 %v1577_v24, %v593_v11  ;;  %v1256_v16 = vpop.f32.mrb[14].mxu0  ;;  %v1272_v17 = vpop.f32.mrb[14].mxu1 }
 0x11d   : > { %v1129_v12 = vpack.c.bf16 %v691_v2, %v690_v0  ;;  %v1169_v13 = vpack.c.bf16 %v707_v3, %v706_v1  ;;  %1190 = vst [vmem:[%s1607_s9 + $0x28] sm:$0xff] %v1134_v6   ;;  %v664_v18 = vadd.f32 %v1582_v26, %v627_v8  ;;  %v628_v20 = vmul.f32 %v1256_v16, %v1577_v24  ;;  %v532_v22 = vpop.f32.mrb[15].mxu0  ;;  %v596_v23 = vpop.f32.mrb[15].mxu1 }
 0x11e   : > { %1198 = vst [vmem:[%s1607_s9 + $0x68] sm:$0xff] %v1174_v7   ;;  %v680_v19 = vadd.f32 %v1582_v26, %v643_v9  ;;  %v644_v21 = vmul.f32 %v1272_v17, %v1577_v24  ;;  %v662_v25 = vadd.f32 %v1582_v26, %v625_v14  ;;  %v678_v27 = vadd.f32 %v1582_v26, %v641_v15 }
 0x11f   : > { %1189 = vst [vmem:[%s1607_s9 + $0x20] sm:$0xff] %v1129_v12   ;;  %1197 = vst [vmem:[%s1607_s9 + $0x60] sm:$0xff] %v1169_v13   ;;  %v626_v28 = vmul.f32 %v1577_v24, %v532_v22  ;;  %v642_v29 = vmul.f32 %v1577_v24, %v596_v23  ;;  %v665_v30 = vadd.f32 %v1582_v26, %v628_v20  ;;  %v696_v34 = vmax.f32 %v664_v18, 0.0 }
 0x120   : > { %v681_v31 = vadd.f32 %v1582_v26, %v644_v21  ;;  %v712_v35 = vmax.f32 %v680_v19, 0.0  ;;  %v694_v24 = vmax.f32 %v662_v25, 0.0  ;;  %v710_v38 = vmax.f32 %v678_v27, 0.0 }
 0x121   : > { %v663_v32 = vadd.f32 %v1582_v26, %v626_v28  ;;  %v679_v33 = vadd.f32 %v1582_v26, %v642_v29  ;;  %v697_v36 = vmax.f32 %v665_v30, 0.0 }
 0x122   : > { %v713_v37 = vmax.f32 %v681_v31, 0.0 }
 0x123   : > { %v695_v39 = vmax.f32 %v663_v32, 0.0  ;;  %v711_v40 = vmax.f32 %v679_v33, 0.0  ;;  %v1144_v41 = vpack.c.bf16 %v697_v36, %v696_v34 }
 0x124   : > { %v1184_v42 = vpack.c.bf16 %v713_v37, %v712_v35 }
 0x125   : > { %v1139_v26 = vpack.c.bf16 %v695_v39, %v694_v24  ;;  %v1179_v43 = vpack.c.bf16 %v711_v40, %v710_v38  ;;  %1192 = vst [vmem:[%s1607_s9 + $0x38] sm:$0xff] %v1144_v41  }
 0x126   : > { %1200 = vst [vmem:[%s1607_s9 + $0x78] sm:$0xff] %v1184_v42  }
 0x127   : > { %1191 = vst [vmem:[%s1607_s9 + $0x30] sm:$0xff] %v1139_v26   ;;  %1199 = vst [vmem:[%s1607_s9 + $0x70] sm:$0xff] %v1179_v43  }
 0x128   : > { %1383 = shalt.err (!%p1380_p5)
}
 0x129   : > { %s1384_s29 = scalar_lea.hbm %s1670_s15, 2048  ;;  %s1388_s5 = scalar_lea.hbm %s1729_s3, 16384 }
 0x12a   : > { %p1385_p6 = scmp.ne.s32.totalorder %s1670_s15, %s1384_s29  ;;  %p1389_p10 = scmp.lt.u32.totalorder %s1670_s15, %s1729_s3 }
 0x12b   : > { %p1390_p11 = scmp.lt.u32.totalorder %s1388_s5, %s1384_s29  ;;  %p1392_p13 = scmp.lt.u32.totalorder %s1384_s29, %s1670_s15 }
 0x12c   : > { %p1386_p7 = pnand %p1385_p6, %p1513_p4 }
 0x12d   : > { %p1391_p12 = por %p1390_p11, %p1389_p10 }
 0x12e   : > { %p1387_p9 = pneg %p1386_p7 }
 0x12f   : > { %p1393_p0 = por %p1392_p13, %p1391_p12 }
 0x131   : > { %p1394_p1 = pnand %p1393_p0, %p1387_p9 }
 0x133   : > { %1397 = shalt.err (!%p1394_p1)
}
 0x134   : > { %s1451_s8 = smov 64   ;;  %s1452_s9 = smov 4  }
 0x135   : > { %1289 = dma.vmem_to_hbm [thread:$0]  (%p1513_p4), %s1672_s11, 2048, %s1670_s15, %s1680_s21, %s1451_s8, %s1451_s8, %s1452_s9  }
 0x136 PF: > { %p1295_p2 = scmp.ge.s32.totalorder %s1448_s17, 2  ;;  %s904_s10 = sand.u32 1, %s1428_s12  }
 0x137   : > { %s905_s18 = scalar_lea.sflag [#allocation3], %s904_s10 }
 0x138   : > { %p1292_p3 = pnand %p1295_p2, %p1520_p8 }
 0x13a   : > { %1423 = dma.done.wait (!%p1292_p3), %s905_s18, 2048  }
 0x13b   : > { %1425 = vsyncadd (!%p1292_p3), %s905_s18, 4294965248  ;;  %s16_s17 = sadd.s32 1, %s1448_s17   ;;  %s1732_s12 = smov %s1432_s13 }
 0x13c   : > { %p13_p5 = scmp.ge.s32.totalorder %s16_s17, 10   ;;  %s1733_s13 = smov %s1436_s14 }
 0x13d   : > { %s1734_s14 = smov %s1526_s25  ;;  %s1735_s15 = smov %s1444_s16 }
 0x13e   : > { %s1736_s16 = smov %s1738_s20  ;;  %15 = sbr.rel (!%p13_p5) target bundleno = 4 (0x4), region = 73 }
 0x145   :  { %910 = vsyncpa [#allocation3], 1 }
 0x146   :  { %912 = vsyncpa [#allocation3 + $0x1], 1 }

</bundles_post_ra>
